<compile_context>
chip_gen: v6e
topology: v6e:2x2x1
jax: 0.10.0
libtpu: 0.0.40
codegen_flags: <defaults>
</compile_context>

<pallas_src>
from functools import partial

import numpy as np
import jax
import jax.numpy as jnp
from jax.experimental import pallas as pl
from jax.experimental.pallas import tpu as pltpu


# --------------------------------------------------------------------------
# Host-side helpers: BN folding, boundary masks, stride-subsample selection
# --------------------------------------------------------------------------
def _bn_scale_bias(bn, eps=1e-5):
    scale = bn["gamma"] / jnp.sqrt(bn["var"] + eps)
    bias = bn["beta"] - bn["mean"] * scale
    return scale, bias


def _fold_pw(w, bn):
    """1x1 conv weight (Cout,Cin) -> (bf16 BN-folded weight, f32 bias (Cout,1))."""
    s, b = _bn_scale_bias(bn)
    return (w * s[:, None]).astype(jnp.bfloat16), b[:, None]


def _fold_dw(w, bn):
    """depthwise weight (C,3,3) -> (f32 taps (9,C,1) with BN scale, f32 bias (C,1))."""
    s, b = _bn_scale_bias(bn)
    c = w.shape[0]
    taps = (w.reshape(c, 9) * s[:, None]).T[:, :, None]          # (9, C, 1)
    return taps, b[:, None]


def _fold_params(params, stride):
    f = {}
    b2 = params["branch2"]
    f["b2_pw1_w"], f["b2_pw1_b"] = _fold_pw(b2["pw1_w"], b2["pw1_bn"])
    f["b2_dw_w"], f["b2_dw_b"] = _fold_dw(b2["dw_w"], b2["dw_bn"])
    f["b2_pw2_w"], f["b2_pw2_b"] = _fold_pw(b2["pw2_w"], b2["pw2_bn"])
    if stride > 1:
        b1 = params["branch1"]
        f["b1_dw_w"], f["b1_dw_b"] = _fold_dw(b1["dw_w"], b1["dw_bn"])
        f["b1_pw_w"], f["b1_pw_b"] = _fold_pw(b1["pw_w"], b1["pw_bn"])
    return f


def _make_dw_masks(H, W):
    """(9,1,H*W) f32 {0,1}: mask[k,0,i*W+j]=1 iff source (i+di, j+dj) of tap
    k=(di+1)*3+(dj+1) is inside the image (padding=1 zero-fill)."""
    ii = np.arange(H * W) // W
    jj = np.arange(H * W) % W
    masks = np.empty((9, H * W), np.float32)
    k = 0
    for di in (-1, 0, 1):
        for dj in (-1, 0, 1):
            ok = (ii + di >= 0) & (ii + di < H) & (jj + dj >= 0) & (jj + dj < W)
            masks[k] = ok.astype(np.float32)
            k += 1
    return jnp.asarray(masks.reshape(9, 1, H * W))


def _make_stride_select(H, W, stride):
    """(H*W, Ho*Wo) 0/1 bf16: column (io*Wo+jo) selects source pixel (io*s, jo*s)."""
    Ho = (H - 1) // stride + 1
    Wo = (W - 1) // stride + 1
    S = np.zeros((H * W, Ho * Wo), np.float32)
    src = (np.arange(Ho)[:, None] * stride * W
           + np.arange(Wo)[None, :] * stride).reshape(-1)
    S[src, np.arange(Ho * Wo)] = 1.0
    return jnp.asarray(S, dtype=jnp.bfloat16)


# --------------------------------------------------------------------------
# In-kernel building blocks (all operands are VMEM/vreg-resident)
# --------------------------------------------------------------------------
def _pw_bn_relu(w_ref, b_ref, x):
    """Folded 1x1 conv + BN + ReLU: (Cout,Cin)bf16 @ (Cin,L)bf16 -> f32, then bias/ReLU."""
    y = jnp.dot(w_ref[...], x.astype(jnp.bfloat16),
                preferred_element_type=jnp.float32)
    return jnp.maximum(y + b_ref[...], 0.0)


def _dw3x3(x, taps_ref, masks_ref, W):
    """3x3 depthwise conv (stride 1, padding 1, no bias) via 9 shifted FMAs.
    x: (C, H*W) f32 with the flat spatial dim on lanes;
    taps_ref: (9, C, 1) f32 BN-scaled taps; masks_ref: (9, 1, H*W) f32 {0,1}."""
    L = x.shape[-1]
    acc = taps_ref[4] * x                        # centre tap: always in-bounds
    k = 0
    for di in (-1, 0, 1):
        for dj in (-1, 0, 1):
            if di == 0 and dj == 0:
                k += 1
                continue
            # want shifted[p] = x[p + di*W + dj]  (jnp.roll semantics -> negative shift)
            shift = (-(di * W + dj)) % L
            shifted = pltpu.roll(x, shift, axis=1)
            acc = acc + (taps_ref[k] * shifted) * masks_ref[k]
            k += 1
    return acc


def _dw_subsample(d_full, sel_ref, bias_ref):
    """Apply the stride subsample (HW -> HoWo) with a 0/1 selection matmul + bias."""
    return jnp.dot(d_full.astype(jnp.bfloat16), sel_ref[...],
                   preferred_element_type=jnp.float32) + bias_ref[...]


# --------------------------------------------------------------------------
# Fused kernels (one per stride regime); Nb images per grid step, unrolled
# --------------------------------------------------------------------------
def _fused_s1_kernel(x_ref, w1_ref, b1_ref, dww_ref, dwb_ref, w2_ref, b2_ref,
                     masks_ref, o_ref, *, W):
    """stride == 1: out = shuffle(concat(x1, branch2(x2)))."""
    bf = w1_ref.shape[0]
    for n in range(x_ref.shape[0]):                        # static unroll over images
        x = x_ref[n]                                       # (2*bf, HW), HW on lanes
        x1 = x[:bf, :]                                     # shuffle group 0 (identity)
        y1 = _pw_bn_relu(w1_ref, b1_ref, x[bf:, :])        # (bf, HW)
        d = _dw3x3(y1, dww_ref, masks_ref, W) + dwb_ref[...]
        y2 = _pw_bn_relu(w2_ref, b2_ref, d)                # shuffle group 1 (branch2)
        # one lane-dense full-slab store per image; (N,bf,2*HW) == shuffled NCHW
        # after a free reshape in the wrapper.
        o_ref[n] = jnp.concatenate([x1, y2], axis=-1)


def _fused_sN_kernel(x_ref,
                     a_dww_ref, a_dwb_ref, a_pw_ref, a_pb_ref,          # branch1
                     b_pw1_ref, b_pb1_ref, b_dww_ref, b_dwb_ref,        # branch2
                     b_pw2_ref, b_pb2_ref,
                     masks_ref, sel_ref, o_ref, *, W):
    """stride > 1: out = shuffle(concat(branch1(x), branch2(x)))."""
    for n in range(x_ref.shape[0]):                        # static unroll over images
        x = x_ref[n]                                       # (Cin, HW)
        # branch1: dw(stride) -> BN -> 1x1 -> BN -> ReLU
        d1 = _dw3x3(x, a_dww_ref, masks_ref, W)            # (Cin, HW) stride-1 accum
        d1 = _dw_subsample(d1, sel_ref, a_dwb_ref)         # (Cin, HoWo)
        ya = _pw_bn_relu(a_pw_ref, a_pb_ref, d1)           # (bf, HoWo)
        # branch2: 1x1 -> BN -> ReLU -> dw(stride) -> BN -> 1x1 -> BN -> ReLU
        y1 = _pw_bn_relu(b_pw1_ref, b_pb1_ref, x)          # (bf, HW)
        d2 = _dw3x3(y1, b_dww_ref, masks_ref, W)
        d2 = _dw_subsample(d2, sel_ref, b_dwb_ref)         # (bf, HoWo)
        yb = _pw_bn_relu(b_pw2_ref, b_pb2_ref, d2)         # (bf, HoWo)
        o_ref[n] = jnp.concatenate([ya, yb], axis=-1)      # (bf, 2*HoWo) single store


# --------------------------------------------------------------------------
# Module forward (matches InvertedResidual.forward; NCHW in / NCHW out)
# --------------------------------------------------------------------------
def _const_spec(shape):
    return pl.BlockSpec(shape, lambda b, _n=len(shape): (0,) * _n)


def _pick_batch_block(N):
    """Images per grid step: amortize per-step overhead, but keep >=2 parallel grid
    steps when possible so both v7x TensorCores get work."""
    if N <= 1:
        return 1
    target = min(8, max(1, N // 2))
    for nb in range(target, 0, -1):
        if N % nb == 0:
            return nb
    return 1


@partial(jax.jit, static_argnames=("stride",))
def inverted_residual(params, x_nchw, *, stride):
    N, C, H, W = x_nchw.shape
    HW = H * W
    Ho = (H - 1) // stride + 1
    Wo = (W - 1) // stride + 1
    HoWo = Ho * Wo

    folded = _fold_params(params, stride)
    bf = folded["b2_pw2_w"].shape[0]
    if stride == 1:
        assert C == 2 * bf, "stride==1 requires inp == oup == 2*branch_features"

    masks = _make_dw_masks(H, W)                     # (9,1,HW) trace-time constant
    x3 = x_nchw.reshape(N, C, HW)                    # free contiguous reshape

    Nb = _pick_batch_block(N)
    grid = (N // Nb,)

    if stride == 1:
        kernel = partial(_fused_s1_kernel, W=W)
        args = (x3,
                folded["b2_pw1_w"], folded["b2_pw1_b"],
                folded["b2_dw_w"], folded["b2_dw_b"],
                folded["b2_pw2_w"], folded["b2_pw2_b"],
                masks)
    else:
        sel = _make_stride_select(H, W, stride)      # (HW, HoWo) bf16 0/1
        kernel = partial(_fused_sN_kernel, W=W)
        args = (x3,
                folded["b1_dw_w"], folded["b1_dw_b"],
                folded["b1_pw_w"], folded["b1_pw_b"],
                folded["b2_pw1_w"], folded["b2_pw1_b"],
                folded["b2_dw_w"], folded["b2_dw_b"],
                folded["b2_pw2_w"], folded["b2_pw2_b"],
                masks, sel)

    in_specs = [pl.BlockSpec((Nb, C, HW), lambda b: (b, 0, 0))]
    in_specs += [_const_spec(a.shape) for a in args[1:]]
    out_spec = pl.BlockSpec((Nb, bf, 2 * HoWo), lambda b: (b, 0, 0))

    # Explicit scoped-VMEM budget: double-buffered in/out blocks + constants
    # + headroom for in-kernel f32 temporaries (per-image intermediates).
    const_bytes = sum(int(np.prod(a.shape)) * a.dtype.itemsize for a in args[1:])
    in_bytes = Nb * C * HW * 4
    out_bytes = Nb * bf * 2 * HoWo * 4
    tmp_bytes = 16 * max(C, bf) * HW * 4
    vmem_limit = int(min(max(2 * (in_bytes + out_bytes + const_bytes) + tmp_bytes,
                             4 << 20), 64 << 20))

    out = pl.pallas_call(
        kernel,
        out_shape=jax.ShapeDtypeStruct((N, bf, 2 * HoWo), jnp.float32),
        grid=grid,
        in_specs=in_specs,
        out_specs=out_spec,
        compiler_params=pltpu.CompilerParams(
            dimension_semantics=("parallel",),
            vmem_limit_bytes=vmem_limit),
    )(*args)

    # (N, bf, 2*HoWo) -> (N, 2*bf, Ho, Wo): this free reshape IS concat + channel
    # shuffle(groups=2) + NCHW layout (output channel 2*c+g = group g, channel c).
    return out.reshape(N, 2 * bf, Ho, Wo)


# --------------------------------------------------------------------------
# Deterministic synthetic parameters (PyTorch layout; BN kept unfolded here)
# --------------------------------------------------------------------------
def _init_bn(key, c):
    k1, k2, k3, k4 = jax.random.split(key, 4)
    return {
        "gamma": jax.random.uniform(k1, (c,), minval=0.5, maxval=1.5).astype(jnp.float32),
        "beta": (jax.random.normal(k2, (c,)) * 0.1).astype(jnp.float32),
        "mean": (jax.random.normal(k3, (c,)) * 0.1).astype(jnp.float32),
        "var": jax.random.uniform(k4, (c,), minval=0.5, maxval=1.5).astype(jnp.float32),
    }


def init_params(key, inp, oup, stride):
    assert 1 <= stride <= 3
    bf = oup // 2
    assert stride != 1 or inp == bf << 1
    keys = iter(jax.random.split(key, 16))
    params = {}
    if stride > 1:
        params["branch1"] = {
            "dw_w": (jax.random.normal(next(keys), (inp, 3, 3)) * 0.1).astype(jnp.float32),
            "dw_bn": _init_bn(next(keys), inp),
            "pw_w": (jax.random.normal(next(keys), (bf, inp)) * 0.1).astype(jnp.float32),
            "pw_bn": _init_bn(next(keys), bf),
        }
    c2 = inp if stride > 1 else bf
    params["branch2"] = {
        "pw1_w": (jax.random.normal(next(keys), (bf, c2)) * 0.1).astype(jnp.float32),
        "pw1_bn": _init_bn(next(keys), bf),
        "dw_w": (jax.random.normal(next(keys), (bf, 3, 3)) * 0.1).astype(jnp.float32),
        "dw_bn": _init_bn(next(keys), bf),
        "pw2_w": (jax.random.normal(next(keys), (bf, bf)) * 0.1).astype(jnp.float32),
        "pw2_bn": _init_bn(next(keys), bf),
    }
    return params


# --------------------------------------------------------------------------
# Pure-JAX reference (lax.conv, NCHW) to validate kernel semantics
# --------------------------------------------------------------------------
def _ref_pw_bn_relu(x, w, bn):
    y = jax.lax.conv_general_dilated(
        x, w[:, :, None, None], (1, 1), "VALID",
        dimension_numbers=("NCHW", "OIHW", "NCHW"))
    s, b = _bn_scale_bias(bn)
    return jnp.maximum(y * s[None, :, None, None] + b[None, :, None, None], 0.0)


def _ref_dw_bn(x, w, bn, stride):
    C = x.shape[1]
    y = jax.lax.conv_general_dilated(
        x, w[:, None, :, :], (stride, stride), ((1, 1), (1, 1)),
        dimension_numbers=("NCHW", "OIHW", "NCHW"), feature_group_count=C)
    s, b = _bn_scale_bias(bn)
    return y * s[None, :, None, None] + b[None, :, None, None]


def _channel_shuffle_nchw(x, groups):
    N, C, H, W = x.shape
    x = x.reshape(N, groups, C // groups, H, W)
    x = jnp.transpose(x, (0, 2, 1, 3, 4))
    return x.reshape(N, C, H, W)


def _ref_forward(params, x, stride):
    p2 = params["branch2"]

    def b2(z):
        z = _ref_pw_bn_relu(z, p2["pw1_w"], p2["pw1_bn"])
        z = _ref_dw_bn(z, p2["dw_w"], p2["dw_bn"], stride)
        return _ref_pw_bn_relu(z, p2["pw2_w"], p2["pw2_bn"])

    if stride == 1:
        c = x.shape[1]
        out = jnp.concatenate([x[:, : c // 2], b2(x[:, c // 2:])], axis=1)
    else:
        p1 = params["branch1"]
        y1 = _ref_dw_bn(x, p1["dw_w"], p1["dw_bn"], stride)
        y1 = _ref_pw_bn_relu(y1, p1["pw_w"], p1["pw_bn"])
        out = jnp.concatenate([y1, b2(x)], axis=1)
    return _channel_shuffle_nchw(out, 2)


if __name__ == "__main__":
    key = jax.random.PRNGKey(0)
    k_x1, k_p1, k_x2, k_p2 = jax.random.split(key, 4)

    # bf16 pointwise-matmul operands -> slightly looser tolerance than pure-f32.
    TOL = dict(atol=2e-2, rtol=2e-2)

    # Case 1: stride = 1 (identity half + branch2; requires inp == oup)
    N, C, H, W = 2, 32, 16, 16
    xin1 = jax.random.normal(k_x1, (N, C, H, W), dtype=jnp.float32)
    p1 = init_params(k_p1, inp=C, oup=C, stride=1)
    out1 = jax.block_until_ready(inverted_residual(p1, xin1, stride=1))
    ref1 = _ref_forward(p1, xin1, 1)
    assert out1.shape == (N, C, H, W)
    assert jnp.allclose(out1, ref1, **TOL), float(jnp.max(jnp.abs(out1 - ref1)))

    # Case 2: stride = 2 (downsampling block, inp=16 -> oup=32)
    inp2, oup2 = 16, 32
    xin2 = jax.random.normal(k_x2, (N, inp2, H, W), dtype=jnp.float32)
    p2 = init_params(k_p2, inp=inp2, oup=oup2, stride=2)
    out2 = jax.block_until_ready(inverted_residual(p2, xin2, stride=2))
    ref2 = _ref_forward(p2, xin2, 2)
    assert out2.shape == (N, oup2, H // 2, W // 2)
    assert jnp.allclose(out2, ref2, **TOL), float(jnp.max(jnp.abs(out2 - ref2)))

    print("KERNEL_OK")
</pallas_src>

<mosaic_0001>
module attributes {stable_mosaic.version = 11 : i64} {
  func.func @_fused_s1_kernel(%arg0: i32, %arg1: memref<1x32x256xf32, #tpu.memory_space<vmem>>, %arg2: memref<16x16xbf16, #tpu.memory_space<vmem>>, %arg3: memref<16x1xf32, #tpu.memory_space<vmem>>, %arg4: memref<9x16x1xf32, #tpu.memory_space<vmem>>, %arg5: memref<16x1xf32, #tpu.memory_space<vmem>>, %arg6: memref<16x16xbf16, #tpu.memory_space<vmem>>, %arg7: memref<16x1xf32, #tpu.memory_space<vmem>>, %arg8: memref<9x1x256xf32, #tpu.memory_space<vmem>>, %arg9: memref<1x16x512xf32, #tpu.memory_space<vmem>>) attributes {dimension_semantics = [#tpu.dimension_semantics<parallel>], iteration_bounds = array<i64: 2>, scalar_prefetch = 0 : i64, scratch_operands = 0 : i64, tpu.core_type = #tpu.core_type<tc>, window_params = [{transform_indices = @transform_0, window_bounds = array<i64: 1, 32, 256>}, {pipeline_mode = #tpu.pipeline_mode<synchronous>, transform_indices = @transform_1, window_bounds = array<i64: 16, 16>}, {pipeline_mode = #tpu.pipeline_mode<synchronous>, transform_indices = @transform_2, window_bounds = array<i64: 16, 1>}, {pipeline_mode = #tpu.pipeline_mode<synchronous>, transform_indices = @transform_3, window_bounds = array<i64: 9, 16, 1>}, {pipeline_mode = #tpu.pipeline_mode<synchronous>, transform_indices = @transform_4, window_bounds = array<i64: 16, 1>}, {pipeline_mode = #tpu.pipeline_mode<synchronous>, transform_indices = @transform_5, window_bounds = array<i64: 16, 16>}, {pipeline_mode = #tpu.pipeline_mode<synchronous>, transform_indices = @transform_6, window_bounds = array<i64: 16, 1>}, {pipeline_mode = #tpu.pipeline_mode<synchronous>, transform_indices = @transform_7, window_bounds = array<i64: 9, 1, 256>}, {transform_indices = @transform_8, window_bounds = array<i64: 1, 16, 512>}]} {
    %c0 = arith.constant 0 : index
    %c0_0 = arith.constant 0 : index
    %c0_1 = arith.constant 0 : index
    %0 = vector.load %arg1[%c0, %c0_0, %c0_1] : memref<1x32x256xf32, #tpu.memory_space<vmem>>, vector<1x32x256xf32>
    %1 = vector.shape_cast %0 : vector<1x32x256xf32> to vector<32x256xf32>
    %2 = vector.extract_strided_slice %1 {offsets = [0, 0], sizes = [16, 256], strides = [1, 1]} : vector<32x256xf32> to vector<16x256xf32>
    %3 = vector.extract_strided_slice %1 {offsets = [16, 0], sizes = [16, 256], strides = [1, 1]} : vector<32x256xf32> to vector<16x256xf32>
    %c0_2 = arith.constant 0 : index
    %c0_3 = arith.constant 0 : index
    %4 = vector.load %arg2[%c0_2, %c0_3] : memref<16x16xbf16, #tpu.memory_space<vmem>>, vector<16x16xbf16>
    %5 = arith.truncf %3 : vector<16x256xf32> to vector<16x256xbf16>
    %cst = arith.constant dense<0.000000e+00> : vector<16x256xf32>
    %6 = tpu.matmul %4, %5, %cst {dimension_numbers = #tpu.dot_dimension_numbers<[1], [0], [0], [1], [0, 0, 1, 1], [], []>} : vector<16x16xbf16>, vector<16x256xbf16>, vector<16x256xf32> -> vector<16x256xf32>
    %c0_4 = arith.constant 0 : index
    %c0_5 = arith.constant 0 : index
    %7 = vector.load %arg3[%c0_4, %c0_5] : memref<16x1xf32, #tpu.memory_space<vmem>>, vector<16x1xf32>
    %8 = vector.broadcast %7 : vector<16x1xf32> to vector<16x256xf32>
    %9 = arith.addf %6, %8 : vector<16x256xf32>
    %cst_6 = arith.constant 0.000000e+00 : f32
    %10 = vector.broadcast %cst_6 : f32 to vector<16x256xf32>
    %11 = arith.maximumf %9, %10 : vector<16x256xf32>
    %c4 = arith.constant 4 : index
    %c0_7 = arith.constant 0 : index
    %c0_8 = arith.constant 0 : index
    %12 = vector.load %arg4[%c4, %c0_7, %c0_8] : memref<9x16x1xf32, #tpu.memory_space<vmem>>, vector<1x16x1xf32>
    %13 = vector.shape_cast %12 : vector<1x16x1xf32> to vector<16x1xf32>
    %14 = vector.broadcast %13 : vector<16x1xf32> to vector<16x256xf32>
    %15 = arith.mulf %14, %11 : vector<16x256xf32>
    %c17_i32 = arith.constant 17 : i32
    %16 = tpu.dynamic_rotate %11 by %c17_i32 dim 1 : vector<16x256xf32>, i32 -> vector<16x256xf32>
    %c0_9 = arith.constant 0 : index
    %c0_10 = arith.constant 0 : index
    %c0_11 = arith.constant 0 : index
    %17 = vector.load %arg4[%c0_9, %c0_10, %c0_11] : memref<9x16x1xf32, #tpu.memory_space<vmem>>, vector<1x16x1xf32>
    %18 = vector.shape_cast %17 : vector<1x16x1xf32> to vector<16x1xf32>
    %19 = vector.broadcast %18 : vector<16x1xf32> to vector<16x256xf32>
    %20 = arith.mulf %19, %16 : vector<16x256xf32>
    %c0_12 = arith.constant 0 : index
    %c0_13 = arith.constant 0 : index
    %c0_14 = arith.constant 0 : index
    %21 = vector.load %arg8[%c0_12, %c0_13, %c0_14] : memref<9x1x256xf32, #tpu.memory_space<vmem>>, vector<1x1x256xf32>
    %22 = vector.shape_cast %21 : vector<1x1x256xf32> to vector<1x256xf32>
    %23 = vector.broadcast %22 : vector<1x256xf32> to vector<16x256xf32>
    %24 = arith.mulf %20, %23 : vector<16x256xf32>
    %25 = arith.addf %15, %24 : vector<16x256xf32>
    %c16_i32 = arith.constant 16 : i32
    %26 = tpu.dynamic_rotate %11 by %c16_i32 dim 1 : vector<16x256xf32>, i32 -> vector<16x256xf32>
    %c1 = arith.constant 1 : index
    %c0_15 = arith.constant 0 : index
    %c0_16 = arith.constant 0 : index
    %27 = vector.load %arg4[%c1, %c0_15, %c0_16] : memref<9x16x1xf32, #tpu.memory_space<vmem>>, vector<1x16x1xf32>
    %28 = vector.shape_cast %27 : vector<1x16x1xf32> to vector<16x1xf32>
    %29 = vector.broadcast %28 : vector<16x1xf32> to vector<16x256xf32>
    %30 = arith.mulf %29, %26 : vector<16x256xf32>
    %c1_17 = arith.constant 1 : index
    %c0_18 = arith.constant 0 : index
    %c0_19 = arith.constant 0 : index
    %31 = vector.load %arg8[%c1_17, %c0_18, %c0_19] : memref<9x1x256xf32, #tpu.memory_space<vmem>>, vector<1x1x256xf32>
    %32 = vector.shape_cast %31 : vector<1x1x256xf32> to vector<1x256xf32>
    %33 = vector.broadcast %32 : vector<1x256xf32> to vector<16x256xf32>
    %34 = arith.mulf %30, %33 : vector<16x256xf32>
    %35 = arith.addf %25, %34 : vector<16x256xf32>
    %c15_i32 = arith.constant 15 : i32
    %36 = tpu.dynamic_rotate %11 by %c15_i32 dim 1 : vector<16x256xf32>, i32 -> vector<16x256xf32>
    %c2 = arith.constant 2 : index
    %c0_20 = arith.constant 0 : index
    %c0_21 = arith.constant 0 : index
    %37 = vector.load %arg4[%c2, %c0_20, %c0_21] : memref<9x16x1xf32, #tpu.memory_space<vmem>>, vector<1x16x1xf32>
    %38 = vector.shape_cast %37 : vector<1x16x1xf32> to vector<16x1xf32>
    %39 = vector.broadcast %38 : vector<16x1xf32> to vector<16x256xf32>
    %40 = arith.mulf %39, %36 : vector<16x256xf32>
    %c2_22 = arith.constant 2 : index
    %c0_23 = arith.constant 0 : index
    %c0_24 = arith.constant 0 : index
    %41 = vector.load %arg8[%c2_22, %c0_23, %c0_24] : memref<9x1x256xf32, #tpu.memory_space<vmem>>, vector<1x1x256xf32>
    %42 = vector.shape_cast %41 : vector<1x1x256xf32> to vector<1x256xf32>
    %43 = vector.broadcast %42 : vector<1x256xf32> to vector<16x256xf32>
    %44 = arith.mulf %40, %43 : vector<16x256xf32>
    %45 = arith.addf %35, %44 : vector<16x256xf32>
    %c1_i32 = arith.constant 1 : i32
    %46 = tpu.dynamic_rotate %11 by %c1_i32 dim 1 : vector<16x256xf32>, i32 -> vector<16x256xf32>
    %c3 = arith.constant 3 : index
    %c0_25 = arith.constant 0 : index
    %c0_26 = arith.constant 0 : index
    %47 = vector.load %arg4[%c3, %c0_25, %c0_26] : memref<9x16x1xf32, #tpu.memory_space<vmem>>, vector<1x16x1xf32>
    %48 = vector.shape_cast %47 : vector<1x16x1xf32> to vector<16x1xf32>
    %49 = vector.broadcast %48 : vector<16x1xf32> to vector<16x256xf32>
    %50 = arith.mulf %49, %46 : vector<16x256xf32>
    %c3_27 = arith.constant 3 : index
    %c0_28 = arith.constant 0 : index
    %c0_29 = arith.constant 0 : index
    %51 = vector.load %arg8[%c3_27, %c0_28, %c0_29] : memref<9x1x256xf32, #tpu.memory_space<vmem>>, vector<1x1x256xf32>
    %52 = vector.shape_cast %51 : vector<1x1x256xf32> to vector<1x256xf32>
    %53 = vector.broadcast %52 : vector<1x256xf32> to vector<16x256xf32>
    %54 = arith.mulf %50, %53 : vector<16x256xf32>
    %55 = arith.addf %45, %54 : vector<16x256xf32>
    %c255_i32 = arith.constant 255 : i32
    %56 = tpu.dynamic_rotate %11 by %c255_i32 dim 1 : vector<16x256xf32>, i32 -> vector<16x256xf32>
    %c5 = arith.constant 5 : index
    %c0_30 = arith.constant 0 : index
    %c0_31 = arith.constant 0 : index
    %57 = vector.load %arg4[%c5, %c0_30, %c0_31] : memref<9x16x1xf32, #tpu.memory_space<vmem>>, vector<1x16x1xf32>
    %58 = vector.shape_cast %57 : vector<1x16x1xf32> to vector<16x1xf32>
    %59 = vector.broadcast %58 : vector<16x1xf32> to vector<16x256xf32>
    %60 = arith.mulf %59, %56 : vector<16x256xf32>
    %c5_32 = arith.constant 5 : index
    %c0_33 = arith.constant 0 : index
    %c0_34 = arith.constant 0 : index
    %61 = vector.load %arg8[%c5_32, %c0_33, %c0_34] : memref<9x1x256xf32, #tpu.memory_space<vmem>>, vector<1x1x256xf32>
    %62 = vector.shape_cast %61 : vector<1x1x256xf32> to vector<1x256xf32>
    %63 = vector.broadcast %62 : vector<1x256xf32> to vector<16x256xf32>
    %64 = arith.mulf %60, %63 : vector<16x256xf32>
    %65 = arith.addf %55, %64 : vector<16x256xf32>
    %c241_i32 = arith.constant 241 : i32
    %66 = tpu.dynamic_rotate %11 by %c241_i32 dim 1 : vector<16x256xf32>, i32 -> vector<16x256xf32>
    %c6 = arith.constant 6 : index
    %c0_35 = arith.constant 0 : index
    %c0_36 = arith.constant 0 : index
    %67 = vector.load %arg4[%c6, %c0_35, %c0_36] : memref<9x16x1xf32, #tpu.memory_space<vmem>>, vector<1x16x1xf32>
    %68 = vector.shape_cast %67 : vector<1x16x1xf32> to vector<16x1xf32>
    %69 = vector.broadcast %68 : vector<16x1xf32> to vector<16x256xf32>
    %70 = arith.mulf %69, %66 : vector<16x256xf32>
    %c6_37 = arith.constant 6 : index
    %c0_38 = arith.constant 0 : index
    %c0_39 = arith.constant 0 : index
    %71 = vector.load %arg8[%c6_37, %c0_38, %c0_39] : memref<9x1x256xf32, #tpu.memory_space<vmem>>, vector<1x1x256xf32>
    %72 = vector.shape_cast %71 : vector<1x1x256xf32> to vector<1x256xf32>
    %73 = vector.broadcast %72 : vector<1x256xf32> to vector<16x256xf32>
    %74 = arith.mulf %70, %73 : vector<16x256xf32>
    %75 = arith.addf %65, %74 : vector<16x256xf32>
    %c240_i32 = arith.constant 240 : i32
    %76 = tpu.dynamic_rotate %11 by %c240_i32 dim 1 : vector<16x256xf32>, i32 -> vector<16x256xf32>
    %c7 = arith.constant 7 : index
    %c0_40 = arith.constant 0 : index
    %c0_41 = arith.constant 0 : index
    %77 = vector.load %arg4[%c7, %c0_40, %c0_41] : memref<9x16x1xf32, #tpu.memory_space<vmem>>, vector<1x16x1xf32>
    %78 = vector.shape_cast %77 : vector<1x16x1xf32> to vector<16x1xf32>
    %79 = vector.broadcast %78 : vector<16x1xf32> to vector<16x256xf32>
    %80 = arith.mulf %79, %76 : vector<16x256xf32>
    %c7_42 = arith.constant 7 : index
    %c0_43 = arith.constant 0 : index
    %c0_44 = arith.constant 0 : index
    %81 = vector.load %arg8[%c7_42, %c0_43, %c0_44] : memref<9x1x256xf32, #tpu.memory_space<vmem>>, vector<1x1x256xf32>
    %82 = vector.shape_cast %81 : vector<1x1x256xf32> to vector<1x256xf32>
    %83 = vector.broadcast %82 : vector<1x256xf32> to vector<16x256xf32>
    %84 = arith.mulf %80, %83 : vector<16x256xf32>
    %85 = arith.addf %75, %84 : vector<16x256xf32>
    %c239_i32 = arith.constant 239 : i32
    %86 = tpu.dynamic_rotate %11 by %c239_i32 dim 1 : vector<16x256xf32>, i32 -> vector<16x256xf32>
    %c8 = arith.constant 8 : index
    %c0_45 = arith.constant 0 : index
    %c0_46 = arith.constant 0 : index
    %87 = vector.load %arg4[%c8, %c0_45, %c0_46] : memref<9x16x1xf32, #tpu.memory_space<vmem>>, vector<1x16x1xf32>
    %88 = vector.shape_cast %87 : vector<1x16x1xf32> to vector<16x1xf32>
    %89 = vector.broadcast %88 : vector<16x1xf32> to vector<16x256xf32>
    %90 = arith.mulf %89, %86 : vector<16x256xf32>
    %c8_47 = arith.constant 8 : index
    %c0_48 = arith.constant 0 : index
    %c0_49 = arith.constant 0 : index
    %91 = vector.load %arg8[%c8_47, %c0_48, %c0_49] : memref<9x1x256xf32, #tpu.memory_space<vmem>>, vector<1x1x256xf32>
    %92 = vector.shape_cast %91 : vector<1x1x256xf32> to vector<1x256xf32>
    %93 = vector.broadcast %92 : vector<1x256xf32> to vector<16x256xf32>
    %94 = arith.mulf %90, %93 : vector<16x256xf32>
    %95 = arith.addf %85, %94 : vector<16x256xf32>
    %c0_50 = arith.constant 0 : index
    %c0_51 = arith.constant 0 : index
    %96 = vector.load %arg5[%c0_50, %c0_51] : memref<16x1xf32, #tpu.memory_space<vmem>>, vector<16x1xf32>
    %97 = vector.broadcast %96 : vector<16x1xf32> to vector<16x256xf32>
    %98 = arith.addf %95, %97 : vector<16x256xf32>
    %c0_52 = arith.constant 0 : index
    %c0_53 = arith.constant 0 : index
    %99 = vector.load %arg6[%c0_52, %c0_53] : memref<16x16xbf16, #tpu.memory_space<vmem>>, vector<16x16xbf16>
    %100 = arith.truncf %98 : vector<16x256xf32> to vector<16x256xbf16>
    %cst_54 = arith.constant dense<0.000000e+00> : vector<16x256xf32>
    %101 = tpu.matmul %99, %100, %cst_54 {dimension_numbers = #tpu.dot_dimension_numbers<[1], [0], [0], [1], [0, 0, 1, 1], [], []>} : vector<16x16xbf16>, vector<16x256xbf16>, vector<16x256xf32> -> vector<16x256xf32>
    %c0_55 = arith.constant 0 : index
    %c0_56 = arith.constant 0 : index
    %102 = vector.load %arg7[%c0_55, %c0_56] : memref<16x1xf32, #tpu.memory_space<vmem>>, vector<16x1xf32>
    %103 = vector.broadcast %102 : vector<16x1xf32> to vector<16x256xf32>
    %104 = arith.addf %101, %103 : vector<16x256xf32>
    %cst_57 = arith.constant 0.000000e+00 : f32
    %105 = vector.broadcast %cst_57 : f32 to vector<16x256xf32>
    %106 = arith.maximumf %104, %105 : vector<16x256xf32>
    %107 = tpu.concatenate %2, %106 in 1 : vector<16x256xf32>, vector<16x256xf32> -> vector<16x512xf32>
    %c0_58 = arith.constant 0 : index
    %c0_59 = arith.constant 0 : index
    %c0_60 = arith.constant 0 : index
    %108 = vector.load %arg9[%c0_58, %c0_59, %c0_60] : memref<1x16x512xf32, #tpu.memory_space<vmem>>, vector<1x16x512xf32>
    %109 = vector.shape_cast %108 : vector<1x16x512xf32> to vector<16x512xf32>
    %110 = vector.shape_cast %107 : vector<16x512xf32> to vector<1x16x512xf32>
    tpu.vector_store %arg9[%c0_58, %c0_59, %c0_60], %110 {strides = array<i32>} : memref<1x16x512xf32, #tpu.memory_space<vmem>>, vector<1x16x512xf32>,
    return
  }
  func.func @transform_0(%arg0: i32) -> (i32, i32, i32) {
    %c0_i32 = arith.constant 0 : i32
    %c0_i32_0 = arith.constant 0 : i32
    %c0_i32_1 = arith.constant 0 : i32
    return %arg0, %c0_i32, %c0_i32_0 : i32, i32, i32
  }
  func.func @transform_1(%arg0: i32) -> (i32, i32) {
    %c0_i32 = arith.constant 0 : i32
    %c0_i32_0 = arith.constant 0 : i32
    %c0_i32_1 = arith.constant 0 : i32
    return %c0_i32, %c0_i32_0 : i32, i32
  }
  func.func @transform_2(%arg0: i32) -> (i32, i32) {
    %c0_i32 = arith.constant 0 : i32
    %c0_i32_0 = arith.constant 0 : i32
    %c0_i32_1 = arith.constant 0 : i32
    return %c0_i32, %c0_i32_0 : i32, i32
  }
  func.func @transform_3(%arg0: i32) -> (i32, i32, i32) {
    %c0_i32 = arith.constant 0 : i32
    %c0_i32_0 = arith.constant 0 : i32
    %c0_i32_1 = arith.constant 0 : i32
    %c0_i32_2 = arith.constant 0 : i32
    return %c0_i32, %c0_i32_0, %c0_i32_1 : i32, i32, i32
  }
  func.func @transform_4(%arg0: i32) -> (i32, i32) {
    %c0_i32 = arith.constant 0 : i32
    %c0_i32_0 = arith.constant 0 : i32
    %c0_i32_1 = arith.constant 0 : i32
    return %c0_i32, %c0_i32_0 : i32, i32
  }
  func.func @transform_5(%arg0: i32) -> (i32, i32) {
    %c0_i32 = arith.constant 0 : i32
    %c0_i32_0 = arith.constant 0 : i32
    %c0_i32_1 = arith.constant 0 : i32
    return %c0_i32, %c0_i32_0 : i32, i32
  }
  func.func @transform_6(%arg0: i32) -> (i32, i32) {
    %c0_i32 = arith.constant 0 : i32
    %c0_i32_0 = arith.constant 0 : i32
    %c0_i32_1 = arith.constant 0 : i32
    return %c0_i32, %c0_i32_0 : i32, i32
  }
  func.func @transform_7(%arg0: i32) -> (i32, i32, i32) {
    %c0_i32 = arith.constant 0 : i32
    %c0_i32_0 = arith.constant 0 : i32
    %c0_i32_1 = arith.constant 0 : i32
    %c0_i32_2 = arith.constant 0 : i32
    return %c0_i32, %c0_i32_0, %c0_i32_1 : i32, i32, i32
  }
  func.func @transform_8(%arg0: i32) -> (i32, i32, i32) {
    %c0_i32 = arith.constant 0 : i32
    %c0_i32_0 = arith.constant 0 : i32
    %c0_i32_1 = arith.constant 0 : i32
    return %arg0, %c0_i32, %c0_i32_0 : i32, i32, i32
  }
}

</mosaic_0001>

<bundles_post_ra>
// kernel: inverted_residual.1
= control target key start
LH: loop header
LB: loop body
LE: loop exit
PB: predicated region body
PF: predicated region fallthrough
CT: control target
= control target key end

     0   :  { %s1085_s27 = smov 0   ;;  %s1531_s0 = inlined_call_operand.vmem [shape: f32[2,32,256], index: 0, kind: input, shape index: {}]   ;;  %s1532_s1 = inlined_call_operand.vmem [shape: bf16[16,16], index: 1, kind: input, shape index: {}]   ;;  %s1533_s2 = inlined_call_operand.vmem [shape: f32[16,1], index: 2, kind: input, shape index: {}]   ;;  %s1534_s3 = inlined_call_operand.vmem [shape: f32[9,16,1], index: 3, kind: input, shape index: {}]   ;;  %s1535_s4 = inlined_call_operand.vmem [shape: f32[16,1], index: 4, kind: input, shape index: {}]   ;;  %s1536_s5 = inlined_call_operand.vmem [shape: bf16[16,16], index: 5, kind: input, shape index: {}]   ;;  %s1537_s6 = inlined_call_operand.vmem [shape: f32[16,1], index: 6, kind: input, shape index: {}]   ;;  %s1538_s7 = inlined_call_operand.vmem [shape: f32[9,1,256], index: 7, kind: input, shape index: {}]   ;;  %s1539_s8 = inlined_call_operand.vmem [shape: f32[2,16,512], index: 8, kind: output, shape index: {}]  }
   0x1 LB: > { %s962_s28 = sadd.s32 4294967295, %s1029_s27   ;;  %p966_p0 = scmp.ge.s32.totalorder %s1029_s27, 1  ;;  %s1029_s27 = sphi %s1085_s27, %s18_s27  }
   0x2   : > { %p262_p1 = scmp.lt.s32.totalorder %s1029_s27, 3 }
   0x4   : > { %p263_p2 = pnand %p966_p0, %p262_p1 }
   0x5   : > { %p296_p3 = scmp.lt.s32.totalorder (!%p263_p2), %s962_s28, 1  ;;  %s1032_s17 = smov (!%p263_p2), 17  }
   0x6   : > { %266 = sbr.rel (%p263_p2) target bundleno = 622 (0x26e), region = 52  ;;  %s1033_s18 = smov (!%p263_p2), 16  }
   0x7   : > { %s1034_s19 = smov (!%p263_p2), 15   ;;  %s1035_s20 = smov (!%p263_p2), 1  }
   0x8   : > { %s1036_s21 = smov (!%p263_p2), 127   ;;  %s1037_s22 = smov (!%p263_p2), 113  }
   0x9   : > { %s1038_s23 = smov (!%p263_p2), 112   ;;  %s1039_s24 = smov (!%p263_p2), 111  }
   0xb   : > { %v1031_v0 = vmov 0   ;;  %v319_v1 = vld [vmem:[%s1533_s2] sm:$0xff]  ;;  %s1541_s28 = smov (!%p296_p3, %s962_s28), 1  ;;  %v320_v2 = vld [vmem:[%s1533_s2 + $0x8] sm:$0xff]  ;;  %vm336_vm0 = vcmask 130048   ;;  %v975_v14 = vld [vmem:[%s1534_s3 + $0x10] sm:$0xff] }
   0xc   : > { %372 = vmatprep.mubr.bf16.mxu0 %v1031_v0  ;;  %1019 = vset.pattern.permute.xlu0 %v1031_v0  ;;  %s1000_s11 = sshll.u32 %s1541_s28, 6  ;;  %v419_v3 = vld [vmem:[%s1534_s3] sm:$0xff]  ;;  %v420_v4 = vld [vmem:[%s1534_s3 + $0x8] sm:$0xff]  ;;  %v976_v15 = vld [vmem:[%s1534_s3 + $0x18] sm:$0xff] }
   0xd   : > { %323 = vperm.xlu0 %1019, %v319_v1   ;;  %1020 = vset.pattern.permute.xlu1 %v1031_v0  ;;  %s1110_s16 = scalar_lea.vmem %s1531_s0, %s1000_s11  ;;  %v973_v7 = vld [vmem:[%s1534_s3 + $0x40] sm:$0xff]  ;;  %v974_v13 = vld [vmem:[%s1534_s3 + $0x48] sm:$0xff]  ;;  %v981_v18 = vld [vmem:[%s1534_s3 + $0x30] sm:$0xff] }
   0xe   : > { %884 = vmatprep.mubr.bf16.mxu1 %v1031_v0  ;;  %423 = vperm.xlu1 %1020, %v419_v3   ;;  %v312_v5 = vld [vmem:[%s1110_s16 + $0x28] sm:$0xff]  ;;  %v314_v6 = vld [vmem:[%s1110_s16 + $0x38] sm:$0xff]  ;;  %v311_v9 = vld [vmem:[%s1110_s16 + $0x20] sm:$0xff] }
   0xf   : > { %v318_v8 = vpack.c.bf16 %v314_v6, %v312_v5  ;;  %v313_v10 = vld [vmem:[%s1110_s16 + $0x30] sm:$0xff]  ;;  %v1021_v12 = vld [vmem:[%s1532_s1] sm:$0xff]   ;;  %v979_v17 = vld [vmem:[%s1534_s3 + $0x28] sm:$0xff] }
  0x10   : > { %v317_v11 = vpack.c.bf16 %v313_v10, %v311_v9  ;;  %v978_v16 = vld [vmem:[%s1534_s3 + $0x20] sm:$0xff]  ;;  %v982_v19 = vld [vmem:[%s1534_s3 + $0x38] sm:$0xff]  ;;  %v984_v20 = vld [vmem:[%s1534_s3 + $0x50] sm:$0xff] }
  0x11   : > { %328 = vperm.xlu0 %1019, %v320_v2   ;;  %354 = vmatprep.subr.bf16.mxu0 %v318_v8  ;;  %v985_v21 = vld [vmem:[%s1534_s3 + $0x58] sm:$0xff]  ;;  %v987_v22 = vld [vmem:[%s1534_s3 + $0x60] sm:$0xff]  ;;  %v988_v23 = vld [vmem:[%s1534_s3 + $0x68] sm:$0xff] }
  0x12   : > { %428 = vperm.xlu1 %1020, %v420_v4   ;;  %355 = vmatpush1.bf16.msra.mxu0 %v317_v11  ;;  %v990_v24 = vld [vmem:[%s1534_s3 + $0x70] sm:$0xff]  ;;  %v991_v25 = vld [vmem:[%s1534_s3 + $0x78] sm:$0xff]  ;;  %v993_v26 = vld [vmem:[%s1534_s3 + $0x80] sm:$0xff] }
  0x13   : > { %v994_v27 = vld [vmem:[%s1534_s3 + $0x88] sm:$0xff]  ;;  %v812_v42 = vld [vmem:[%s1535_s4] sm:$0xff]  ;;  %v309_v51 = vld [vmem:[%s1110_s16 + $0x10] sm:$0xff] }
  0x14   : > { %v813_v44 = vld [vmem:[%s1535_s4 + $0x8] sm:$0xff]  ;;  %v832_v45 = vld [vmem:[%s1537_s6] sm:$0xff]  ;;  %v310_v52 = vld [vmem:[%s1110_s16 + $0x18] sm:$0xff] }
  0x15   : > { %392 = vperm.xlu0 %1019, %v973_v7   ;;  %972 = vmatmul.mubr.msk.bf16.vlgmr.msra.gmra.mxu0 %vm336_vm0, %v1021_v12  ;;  %v307_v48 = vld [vmem:[%s1110_s16] sm:$0xff]  ;;  %v833_v49 = vld [vmem:[%s1537_s6 + $0x8] sm:$0xff] }
  0x16   : > { %397 = vperm.xlu1 %1020, %v974_v13   ;;  %v308_v50 = vld [vmem:[%s1110_s16 + $0x8] sm:$0xff] }
  0x19   : > { %473 = vperm.xlu0 %1019, %v975_v14  }
  0x1a   : > { %478 = vperm.xlu1 %1020, %v976_v15   ;;  %v412_v15 = vlaneseq }
  0x1d   : > { %524 = vperm.xlu0 %1019, %v978_v16  }
  0x1e   : > { %529 = vperm.xlu1 %1020, %v979_v17  }
  0x21   : > { %575 = vperm.xlu0 %1019, %v981_v18   ;;  %v438_v18 = vshrl.u32 %v412_v15, 7 }
  0x22   : > { %580 = vperm.xlu1 %1020, %v982_v19   ;;  %v1294_v19 = vand.u32 127, %v412_v15 }
  0x24   : > { %vm414_vm1 = vcmp.lt.s32.totalorder %v1294_v19, 17  ;;  %vm463_vm2 = vcmp.lt.s32.totalorder %v1294_v19, 16  ;;  %vm514_vm3 = vcmp.lt.s32.totalorder %v1294_v19, 15  ;;  %vm565_vm4 = vcmp.lt.s32.totalorder %v1294_v19, 1 }
  0x25   : > { %626 = vperm.xlu0 %1019, %v984_v20   ;;  %vm616_vm5 = vcmp.lt.s32.totalorder %v1294_v19, 127  ;;  %vm667_vm6 = vcmp.lt.s32.totalorder %v1294_v19, 113  ;;  %vm718_vm7 = vcmp.lt.s32.totalorder %v1294_v19, 112  ;;  %vm769_vm8 = vcmp.lt.s32.totalorder %v1294_v19, 111 }
  0x26   : > { %631 = vperm.xlu1 %1020, %v985_v21  }
  0x29   : > { %677 = vperm.xlu0 %1019, %v987_v22   ;;  %v1300_v22 = vsub.s32 0, %v438_v18 }
  0x2a   : > { %682 = vperm.xlu1 %1020, %v988_v23   ;;  %v1302_v23 = vsub.s32 1, %v438_v18 }
  0x2d   : > { %728 = vperm.xlu0 %1019, %v990_v24   ;;  %v435_v24 = vld [vmem:[%s1538_s7] sm:$0x3] }
  0x2e   : > { %733 = vperm.xlu1 %1020, %v991_v25  }
  0x31   : > { %779 = vperm.xlu0 %1019, %v993_v26   ;;  %v977_v26 = vld [vmem:[%s1538_s7 + $0x2] sm:$0x3] }
  0x32   : > { %784 = vperm.xlu1 %1020, %v994_v27  }
  0x88   : > { %v324_v28 = vpop.permute.xlu0 %323 }
  0x89   : > { %v1217_v43 = vpop.permute.xlu1 %423 }
  0x8c   : > { %v329_v33 = vpop.permute.xlu0 %328 }
  0x8d   : > { %v1226_v47 = vpop.permute.xlu1 %428 }
  0x90   : > { %v393_v46 = vpop.permute.xlu0 %392 }
  0x91   : > { %v398_v54 = vpop.permute.xlu1 %397 }
  0x94   : > { %v1246_v53 = vpop.permute.xlu0 %473 }
  0x95   : > { %v1248_v55 = vpop.permute.xlu1 %478 }
  0x98   : > { %v1250_v56 = vpop.permute.xlu0 %524 }
  0x99   : > { %v1252_v57 = vpop.permute.xlu1 %529 }
  0x9c   : > { %v1254_v58 = vpop.permute.xlu0 %575 }
  0x9d   : > { %v1256_v59 = vpop.permute.xlu1 %580 }
  0xa0   : > { %v1258_v60 = vpop.permute.xlu0 %626 }
  0xa1   : > { %v1260_v61 = vpop.permute.xlu1 %631 }
  0xa4   : > { %v1262_v62 = vpop.permute.xlu0 %677 }
  0xa5   : > { %v1264_v63 = vpop.permute.xlu1 %682 }
  0xa8   : > { %v1266_v0 = vpop.permute.xlu0 %728 }
  0xa9   : > { %v1268_v1 = vpop.permute.xlu1 %733 }
  0xac   : > { %v1270_v2 = vpop.permute.xlu0 %779 }
  0xad   : > { %v1272_v3 = vpop.permute.xlu1 %784 }
  0xd5   : > { %v374_v29 = vpop.f32.mrf.mxu0 }
  0xd6   : > { %v375_v30 = vadd.f32 %v374_v29, %v324_v28 }
  0xd7   : > { %v376_v31 = vpop.f32.mrf.mxu0 }
  0xd8   : > { %v1171_v32 = vmax.f32 %v375_v30, 0.0  ;;  %v377_v37 = vadd.f32 %v376_v31, %v324_v28  ;;  %v440_v30 = vrot.slane %v435_v24, %v1300_v22  ;;  %v444_v31 = vrot.slane %v435_v24, %v1302_v23  ;;  %v992_v24 = vld [vmem:[%s1538_s7 + $0xe] sm:$0x3] }
  0xd9   : > { %v378_v34 = vpop.f32.mrf.mxu0 }
  0xda   : > { %v379_v35 = vadd.f32 %v378_v34, %v329_v33  ;;  %404 = vrot.lane.b32.xlu0 %v1171_v32, %s1032_s17  ;;  %v1192_v39 = vmax.f32 %v377_v37, 0.0  ;;  %v400_v25 = vmul.f32 %v393_v46, %v1171_v32  ;;  %v980_v34 = vld [vmem:[%s1538_s7 + $0x4] sm:$0x3]  ;;  %v983_v37 = vld [vmem:[%s1538_s7 + $0x6] sm:$0x3] }
  0xdb   : > { %v380_v38 = vpop.f32.mrf.mxu0 }
  0xdc   : > { %v1175_v36 = vmax.f32 %v379_v35, 0.0  ;;  %v381_v40 = vadd.f32 %v380_v38, %v329_v33  ;;  %v401_v29 = vmul.f32 %v393_v46, %v1192_v39 }
  0xde   : > { %406 = vrot.lane.b32.xlu1 %v1175_v36, %s1032_s17  ;;  %455 = vrot.lane.b32.xlu0 %v1171_v32, %s1033_s18  ;;  %v1197_v41 = vmax.f32 %v381_v40, 0.0  ;;  %v402_v27 = vmul.f32 %v398_v54, %v1175_v36  ;;  %v491_v40 = vrot.slane %v977_v26, %v1300_v22 }
  0xe2   : > { %457 = vrot.lane.b32.xlu1 %v1175_v36, %s1033_s18  ;;  %506 = vrot.lane.b32.xlu0 %v1171_v32, %s1034_s19 }
  0xe6   : > { %508 = vrot.lane.b32.xlu1 %v1175_v36, %s1034_s19  ;;  %557 = vrot.lane.b32.xlu0 %v1171_v32, %s1035_s20 }
  0xea   : > { %559 = vrot.lane.b32.xlu1 %v1175_v36, %s1035_s20  ;;  %608 = vrot.lane.b32.xlu0 %v1171_v32, %s1036_s21 }
  0xee   : > { %610 = vrot.lane.b32.xlu1 %v1175_v36, %s1036_s21  ;;  %659 = vrot.lane.b32.xlu0 %v1171_v32, %s1037_s22 }
  0xf2   : > { %661 = vrot.lane.b32.xlu1 %v1175_v36, %s1037_s22  ;;  %710 = vrot.lane.b32.xlu0 %v1171_v32, %s1038_s23 }
  0xf6   : > { %712 = vrot.lane.b32.xlu1 %v1175_v36, %s1038_s23  ;;  %761 = vrot.lane.b32.xlu0 %v1171_v32, %s1039_s24  ;;  %v403_v32 = vmul.f32 %v398_v54, %v1197_v41 }
  0xfa   : > { %763 = vrot.lane.b32.xlu1 %v1175_v36, %s1039_s24  ;;  %408 = vrot.lane.b32.xlu0 %v1192_v39, %s1032_s17 }
  0xfe   : > { %410 = vrot.lane.b32.xlu1 %v1197_v41, %s1032_s17  ;;  %459 = vrot.lane.b32.xlu0 %v1192_v39, %s1033_s18  ;;  %s1240_s17 = scalar_lea.vmem %s1539_s8, %s1000_s11 }
  0xff   : > { %899 = vst [vmem:[%s1240_s17] sm:$0xff] %v307_v48  ;;  %900 = vst [vmem:[%s1240_s17 + $0x8] sm:$0xff] %v308_v50  ;;  %v1346_v50 = vrot.slane %v983_v37, %v1300_v22 }
 0x100   : > { %903 = vst [vmem:[%s1240_s17 + $0x20] sm:$0xff] %v309_v51  ;;  %904 = vst [vmem:[%s1240_s17 + $0x28] sm:$0xff] %v310_v52  ;;  %v1349_v51 = vrot.slane %v983_v37, %v1302_v23  ;;  %v989_v52 = vld [vmem:[%s1538_s7 + $0xc] sm:$0x3] }
 0x101   : > { %v1380_v37 = vrot.slane %v989_v52, %v1302_v23 }
 0x102   : > { %461 = vrot.lane.b32.xlu1 %v1197_v41, %s1033_s18  ;;  %510 = vrot.lane.b32.xlu0 %v1192_v39, %s1034_s19 }
 0x106   : > { %512 = vrot.lane.b32.xlu1 %v1197_v41, %s1034_s19  ;;  %561 = vrot.lane.b32.xlu0 %v1192_v39, %s1035_s20 }
 0x10a   : > { %563 = vrot.lane.b32.xlu1 %v1197_v41, %s1035_s20  ;;  %612 = vrot.lane.b32.xlu0 %v1192_v39, %s1036_s21 }
 0x10e   : > { %614 = vrot.lane.b32.xlu1 %v1197_v41, %s1036_s21  ;;  %663 = vrot.lane.b32.xlu0 %v1192_v39, %s1037_s22 }
 0x112   : > { %665 = vrot.lane.b32.xlu1 %v1197_v41, %s1037_s22  ;;  %714 = vrot.lane.b32.xlu0 %v1192_v39, %s1038_s23 }
 0x116   : > { %716 = vrot.lane.b32.xlu1 %v1197_v41, %s1038_s23  ;;  %765 = vrot.lane.b32.xlu0 %v1192_v39, %s1039_s24 }
 0x11a   : > { %767 = vrot.lane.b32.xlu1 %v1197_v41, %s1039_s24  ;;  %816 = vperm.xlu0 %1019, %v812_v42   ;;  %v495_v41 = vrot.slane %v977_v26, %v1302_v23  ;;  %v1336_v42 = vrot.slane %v980_v34, %v1300_v22 }
 0x11e   : > { %821 = vperm.xlu1 %1020, %v813_v44   ;;  %836 = vperm.xlu0 %1019, %v832_v45   ;;  %v1339_v44 = vrot.slane %v980_v34, %v1302_v23  ;;  %v986_v45 = vld [vmem:[%s1538_s7 + $0xa] sm:$0x3] }
 0x11f   : > { %v1368_v34 = vrot.slane %v986_v45, %v1300_v22 }
 0x122   : > { %841 = vperm.xlu1 %1020, %v833_v49  }
 0x14c   : > { %v405_v4 = vpop.permute.xlu0 %404 }
 0x150   : > { %v407_v5 = vpop.permute.xlu1 %406  ;;  %v456_v6 = vpop.permute.xlu0 %455 }
 0x154   : > { %v1274_v7 = vpop.permute.xlu1 %457  ;;  %v1276_v8 = vpop.permute.xlu0 %506 }
 0x158   : > { %v1278_v9 = vpop.permute.xlu1 %508  ;;  %v1280_v10 = vpop.permute.xlu0 %557 }
 0x15c   : > { %v1282_v11 = vpop.permute.xlu1 %559  ;;  %v1284_v12 = vpop.permute.xlu0 %608 }
 0x160   : > { %v1286_v13 = vpop.permute.xlu1 %610  ;;  %v1288_v14 = vpop.permute.xlu0 %659 }
 0x164   : > { %v1290_v16 = vpop.permute.xlu1 %661  ;;  %v1292_v17 = vpop.permute.xlu0 %710 }
 0x168   : > { %v1296_v20 = vpop.permute.xlu1 %712  ;;  %v1298_v21 = vpop.permute.xlu0 %761 }
 0x16c   : > { %v1313_v28 = vpop.permute.xlu1 %763  ;;  %v409_v33 = vpop.permute.xlu0 %408 }
 0x16d   : > { %v415_v35 = vsel %vm414_vm1, %v405_v4, %v409_v33  ;;  %v417_v36 = vsel %vm414_vm1, %v409_v33, %v405_v4 }
 0x16e   : > { %v431_v38 = vmul.f32 %v1217_v43, %v417_v36  ;;  %v432_v39 = vmul.f32 %v1217_v43, %v415_v35  ;;  %v1371_v35 = vrot.slane %v986_v45, %v1302_v23  ;;  %v1386_v45 = vrot.slane %v992_v24, %v1302_v23 }
 0x170   : > { %v447_v46 = vmul.f32 %v440_v30, %v431_v38  ;;  %v448_v43 = vmul.f32 %v444_v31, %v432_v39  ;;  %v411_v48 = vpop.permute.xlu1 %410  ;;  %v460_v49 = vpop.permute.xlu0 %459 }
 0x171   : > { %v416_v54 = vsel %vm414_vm1, %v407_v5, %v411_v48  ;;  %v418_v4 = vsel %vm414_vm1, %v411_v48, %v407_v5  ;;  %v464_v15 = vsel %vm463_vm2, %v456_v6, %v460_v49  ;;  %v466_v18 = vsel %vm463_vm2, %v460_v49, %v456_v6 }
 0x172   : > { %v433_v26 = vmul.f32 %v1226_v47, %v418_v4  ;;  %v434_v33 = vmul.f32 %v1226_v47, %v416_v54  ;;  %v481_v5 = vmul.f32 %v1246_v53, %v466_v18  ;;  %v482_v36 = vmul.f32 %v1246_v53, %v464_v15 }
 0x173   : > { %v1377_v6 = vrot.slane %v989_v52, %v1300_v22  ;;  %v1383_v49 = vrot.slane %v992_v24, %v1300_v22  ;;  %v451_v54 = vadd.f32 %v447_v46, %v400_v25  ;;  %v452_v53 = vadd.f32 %v448_v43, %v401_v29 }
 0x174   : > { %v449_v38 = vmul.f32 %v440_v30, %v433_v26  ;;  %v450_v47 = vmul.f32 %v444_v31, %v434_v33  ;;  %v462_v39 = vpop.permute.xlu1 %461  ;;  %v511_v48 = vpop.permute.xlu0 %510  ;;  %v498_v30 = vmul.f32 %v491_v40, %v481_v5  ;;  %v499_v31 = vmul.f32 %v495_v41, %v482_v36 }
 0x175   : > { %v465_v4 = vsel %vm463_vm2, %v1274_v7, %v462_v39  ;;  %v467_v52 = vsel %vm463_vm2, %v462_v39, %v1274_v7  ;;  %v515_v25 = vsel %vm514_vm3, %v1276_v8, %v511_v48  ;;  %v517_v29 = vsel %vm514_vm3, %v511_v48, %v1276_v8 }
 0x176   : > { %v483_v15 = vmul.f32 %v1248_v55, %v467_v52  ;;  %v484_v18 = vmul.f32 %v1248_v55, %v465_v4  ;;  %v453_v24 = vadd.f32 %v449_v38, %v402_v27  ;;  %v454_v26 = vadd.f32 %v450_v47, %v403_v32 }
 0x177   : > { %v532_v43 = vmul.f32 %v1250_v56, %v517_v29  ;;  %v533_v33 = vmul.f32 %v1250_v56, %v515_v25  ;;  %v503_v56 = vadd.f32 %v499_v31, %v452_v53 }
 0x178   : > { %v500_v46 = vmul.f32 %v491_v40, %v483_v15  ;;  %v501_v7 = vmul.f32 %v495_v41, %v484_v18  ;;  %v513_v5 = vpop.permute.xlu1 %512  ;;  %v562_v55 = vpop.permute.xlu0 %561  ;;  %v502_v41 = vadd.f32 %v498_v30, %v451_v54 }
 0x179   : > { %v516_v27 = vsel %vm514_vm3, %v1278_v9, %v513_v5  ;;  %v518_v32 = vsel %vm514_vm3, %v513_v5, %v1278_v9  ;;  %v566_v8 = vsel %vm565_vm4, %v1280_v10, %v562_v55  ;;  %v568_v40 = vsel %vm565_vm4, %v562_v55, %v1280_v10 }
 0x17a   : > { %v549_v36 = vmul.f32 %v1336_v42, %v532_v43  ;;  %v550_v38 = vmul.f32 %v1339_v44, %v533_v33  ;;  %v534_v47 = vmul.f32 %v1252_v57, %v518_v32  ;;  %v535_v39 = vmul.f32 %v1252_v57, %v516_v27 }
 0x17b   : > { %v583_v9 = vmul.f32 %v1254_v58, %v568_v40  ;;  %v584_v48 = vmul.f32 %v1254_v58, %v566_v8  ;;  %v504_v4 = vadd.f32 %v500_v46, %v453_v24  ;;  %v505_v52 = vadd.f32 %v501_v7, %v454_v26 }
 0x17c   : > { %v553_v15 = vadd.f32 %v549_v36, %v502_v41  ;;  %v554_v10 = vadd.f32 %v550_v38, %v503_v56  ;;  %v564_v54 = vpop.permute.xlu1 %563  ;;  %v613_v53 = vpop.permute.xlu0 %612  ;;  %v551_v30 = vmul.f32 %v1336_v42, %v534_v47  ;;  %v552_v31 = vmul.f32 %v1339_v44, %v535_v39 }
 0x17d   : > { %v600_v18 = vmul.f32 %v1346_v50, %v583_v9  ;;  %v601_v57 = vmul.f32 %v1349_v51, %v584_v48  ;;  %v567_v58 = vsel %vm565_vm4, %v1282_v11, %v564_v54  ;;  %v569_v24 = vsel %vm565_vm4, %v564_v54, %v1282_v11 }
 0x17e   : > { %v617_v26 = vsel %vm616_vm5, %v1284_v12, %v613_v53  ;;  %v619_v42 = vsel %vm616_vm5, %v613_v53, %v1284_v12  ;;  %v555_v44 = vadd.f32 %v551_v30, %v504_v4  ;;  %v556_v25 = vadd.f32 %v552_v31, %v505_v52 }
 0x17f   : > { %v604_v29 = vadd.f32 %v600_v18, %v553_v15  ;;  %v605_v46 = vadd.f32 %v601_v57, %v554_v10  ;;  %v585_v7 = vmul.f32 %v1256_v59, %v569_v24  ;;  %v586_v43 = vmul.f32 %v1256_v59, %v567_v58 }
 0x180   : > { %v634_v11 = vmul.f32 %v1258_v60, %v617_v26  ;;  %v635_v33 = vmul.f32 %v1258_v60, %v619_v42  ;;  %v615_v5 = vpop.permute.xlu1 %614  ;;  %v664_v55 = vpop.permute.xlu0 %663  ;;  %v995_v60 = vld [vmem:[%s1538_s7 + $0x10] sm:$0x3] }
 0x181   : > { %v618_v12 = vsel %vm616_vm5, %v1286_v13, %v615_v5  ;;  %v620_v27 = vsel %vm616_vm5, %v615_v5, %v1286_v13  ;;  %v668_v32 = vsel %vm667_vm6, %v1288_v14, %v664_v55  ;;  %v670_v59 = vsel %vm667_vm6, %v664_v55, %v1288_v14 }
 0x182   : > { %v602_v8 = vmul.f32 %v1346_v50, %v585_v7  ;;  %v603_v40 = vmul.f32 %v1349_v51, %v586_v43  ;;  %v651_v41 = vmul.f32 %v1368_v34, %v634_v11  ;;  %v652_v13 = vmul.f32 %v1371_v35, %v635_v33 }
 0x183   : > { %v636_v56 = vmul.f32 %v1260_v61, %v618_v12  ;;  %v637_v36 = vmul.f32 %v1260_v61, %v620_v27  ;;  %v685_v38 = vmul.f32 %v1262_v62, %v668_v32  ;;  %v686_v14 = vmul.f32 %v1262_v62, %v670_v59 }
 0x184   : > { %v606_v47 = vadd.f32 %v602_v8, %v555_v44  ;;  %v607_v39 = vadd.f32 %v603_v40, %v556_v25  ;;  %v666_v9 = vpop.permute.xlu1 %665  ;;  %v715_v48 = vpop.permute.xlu0 %714  ;;  %v797_v50 = vrot.slane %v995_v60, %v1300_v22  ;;  %v801_v51 = vrot.slane %v995_v60, %v1302_v23 }
 0x185   : > { %v655_v4 = vadd.f32 %v651_v41, %v604_v29  ;;  %v656_v52 = vadd.f32 %v652_v13, %v605_v46  ;;  %v702_v15 = vmul.f32 %v1377_v6, %v685_v38  ;;  %v703_v10 = vmul.f32 %v1380_v37, %v686_v14 }
 0x186   : > { %v669_v61 = vsel %vm667_vm6, %v1290_v16, %v666_v9  ;;  %v671_v62 = vsel %vm667_vm6, %v666_v9, %v1290_v16  ;;  %v719_v22 = vsel %vm718_vm7, %v1292_v17, %v715_v48  ;;  %v721_v23 = vsel %vm718_vm7, %v715_v48, %v1292_v17 }
 0x187   : > { %v653_v54 = vmul.f32 %v1368_v34, %v636_v56  ;;  %v654_v53 = vmul.f32 %v1371_v35, %v637_v36  ;;  %v706_v30 = vadd.f32 %v702_v15, %v655_v4  ;;  %v707_v31 = vadd.f32 %v703_v10, %v656_v52 }
 0x188   : > { %v687_v18 = vmul.f32 %v1264_v63, %v669_v61  ;;  %v688_v57 = vmul.f32 %v1264_v63, %v671_v62  ;;  %v736_v16 = vmul.f32 %v1266_v0, %v719_v22  ;;  %v737_v58 = vmul.f32 %v1266_v0, %v721_v23  ;;  %v717_v24 = vpop.permute.xlu1 %716  ;;  %v766_v26 = vpop.permute.xlu0 %765 }
 0x189   : > { %v720_v17 = vsel %vm718_vm7, %v1296_v20, %v717_v24  ;;  %v722_v34 = vsel %vm718_vm7, %v717_v24, %v1296_v20  ;;  %v770_v35 = vsel %vm769_vm8, %v1298_v21, %v766_v26  ;;  %v772_v63 = vsel %vm769_vm8, %v766_v26, %v1298_v21 }
 0x18a   : > { %v704_v0 = vmul.f32 %v1377_v6, %v687_v18  ;;  %v705_v42 = vmul.f32 %v1380_v37, %v688_v57  ;;  %v753_v44 = vmul.f32 %v1383_v49, %v736_v16  ;;  %v754_v25 = vmul.f32 %v1386_v45, %v737_v58 }
 0x18b   : > { %v738_v29 = vmul.f32 %v1268_v1, %v720_v17  ;;  %v739_v20 = vmul.f32 %v1268_v1, %v722_v34  ;;  %v787_v46 = vmul.f32 %v1270_v2, %v770_v35  ;;  %v788_v7 = vmul.f32 %v1270_v2, %v772_v63 }
 0x18c   : > { %v657_v43 = vadd.f32 %v653_v54, %v606_v47  ;;  %v658_v11 = vadd.f32 %v654_v53, %v607_v39  ;;  %v768_v33 = vpop.permute.xlu1 %767  ;;  %v758_v21 = vadd.f32 %v754_v25, %v707_v31  ;;  %v757_v5 = vadd.f32 %v753_v44, %v706_v30 }
 0x18d   : > { %v755_v6 = vmul.f32 %v1383_v49, %v738_v29  ;;  %v756_v37 = vmul.f32 %v1386_v45, %v739_v20  ;;  %v804_v55 = vmul.f32 %v797_v50, %v787_v46  ;;  %v805_v12 = vmul.f32 %v801_v51, %v788_v7 }
 0x18e   : > { %v708_v27 = vadd.f32 %v704_v0, %v657_v43  ;;  %v709_v32 = vadd.f32 %v705_v42, %v658_v11  ;;  %v771_v1 = vsel %vm769_vm8, %v1313_v28, %v768_v33  ;;  %v773_v2 = vsel %vm769_vm8, %v768_v33, %v1313_v28 }
 0x18f   : > { %v789_v59 = vmul.f32 %v1272_v3, %v771_v1  ;;  %v790_v60 = vmul.f32 %v1272_v3, %v773_v2  ;;  %v809_v8 = vadd.f32 %v805_v12, %v758_v21  ;;  %v808_v49 = vadd.f32 %v804_v55, %v757_v5  ;;  %v1022_v3 = vld [vmem:[%s1536_s5] sm:$0xff]  }
 0x190   : > { %v760_v41 = vadd.f32 %v756_v37, %v709_v32  ;;  %v759_v13 = vadd.f32 %v755_v6, %v708_v27 }
 0x191   : > { %v806_v40 = vmul.f32 %v797_v50, %v789_v59  ;;  %v807_v45 = vmul.f32 %v801_v51, %v790_v60 }
 0x193   : > { %v811_v56 = vadd.f32 %v807_v45, %v760_v41  ;;  %v810_v36 = vadd.f32 %v806_v40, %v759_v13 }
 0x195   : > { %v817_v38 = vpop.permute.xlu0 %816 }
 0x196   : > { %v824_v47 = vadd.f32 %v817_v38, %v808_v49  ;;  %v825_v39 = vadd.f32 %v817_v38, %v809_v8 }
 0x199   : > { %v822_v14 = vpop.permute.xlu1 %821  ;;  %v837_v50 = vpop.permute.xlu0 %836 }
 0x19a   : > { %v826_v9 = vadd.f32 %v822_v14, %v810_v36  ;;  %v827_v19 = vadd.f32 %v822_v14, %v811_v56 }
 0x19c   : > { %v831_v28 = vpack.c.bf16 %v827_v19, %v825_v39  ;;  %v830_v48 = vpack.c.bf16 %v826_v9, %v824_v47 }
 0x19d   : > { %v842_v61 = vpop.permute.xlu1 %841 }
 0x19e   : > { %866 = vmatprep.subr.bf16.mxu1 %v831_v28 }
 0x19f   : > { %867 = vmatpush1.bf16.msra.mxu1 %v830_v48 }
 0x1a2   : > { %997 = vmatmul.mubr.msk.bf16.vlgmr.msra.gmra.mxu1 %vm336_vm0, %v1022_v3 }
 0x262   : > { %v886_v51 = vpop.f32.mrf.mxu1 }
 0x263   : > { %v887_v4 = vadd.f32 %v886_v51, %v837_v50 }
 0x264   : > { %v888_v52 = vpop.f32.mrf.mxu1 }
 0x265   : > { %v895_v15 = vmax.f32 %v887_v4, 0.0  ;;  %v889_v10 = vadd.f32 %v888_v52, %v837_v50 }
 0x266   : > { %v890_v62 = vpop.f32.mrf.mxu1 }
 0x267   : > { %901 = vst [vmem:[%s1240_s17 + $0x10] sm:$0xff] %v895_v15  ;;  %v896_v22 = vmax.f32 %v889_v10, 0.0  ;;  %v891_v23 = vadd.f32 %v890_v62, %v842_v61 }
 0x268   : > { %v892_v54 = vpop.f32.mrf.mxu1 }
 0x269   : > { %902 = vst [vmem:[%s1240_s17 + $0x18] sm:$0xff] %v896_v22  ;;  %v897_v53 = vmax.f32 %v891_v23, 0.0  ;;  %v893_v30 = vadd.f32 %v892_v54, %v842_v61 }
 0x26b   : > { %905 = vst [vmem:[%s1240_s17 + $0x30] sm:$0xff] %v897_v53  ;;  %v898_v31 = vmax.f32 %v893_v30, 0.0 }
 0x26d   : > { %906 = vst [vmem:[%s1240_s17 + $0x38] sm:$0xff] %v898_v31 }
 0x26e PF: > { %s18_s27 = sadd.s32 1, %s1029_s27  }
 0x26f   : > { %p15_p4 = scmp.ge.s32.totalorder %s18_s27, 4  }
 0x271   :  { %17 = sbr.rel (!%p15_p4) target bundleno = 1 (0x1), region = 97 }

</bundles_post_ra>
